<compile_context>
chip_gen: v7x
topology: tpu7x:2x2x1
jax: 0.10.0
libtpu: 0.0.40
codegen_flags: <defaults>
</compile_context>

<pallas_src>
import functools

import jax
import jax.numpy as jnp
from jax.experimental import pallas as pl
from jax.experimental.pallas import tpu as pltpu


# ------------------------------------------------------------------ kernels --

def _pool_excite_kernel(x_ref, w1t_ref, b1_ref, w2t_ref, b2_ref, s_ref, acc_ref,
                        *, inv_hw):
    """Global avg-pool over HW + two 1x1 convs -> per-(n, c) sigmoid scale."""
    hw_i = pl.program_id(1)

    @pl.when(hw_i == 0)
    def _():
        acc_ref[...] = jnp.zeros_like(acc_ref)

    # Accumulate the spatial sum in f32 without materializing an f32 copy of x.
    acc_ref[...] += jnp.sum(x_ref[...], axis=2, dtype=jnp.float32)      # (BN, C)

    @pl.when(hw_i == pl.num_programs(1) - 1)
    def _():
        pooled = acc_ref[...] * inv_hw                                  # (BN, C) f32
        h = jnp.dot(pooled, w1t_ref[...],
                    preferred_element_type=jnp.float32) + b1_ref[...]   # (BN, R)
        h = jnp.maximum(h, 0.0)
        s = jnp.dot(h, w2t_ref[...],
                    preferred_element_type=jnp.float32) + b2_ref[...]   # (BN, C)
        s_ref[...] = jax.nn.sigmoid(s).astype(s_ref.dtype)


def _scale_kernel(x_ref, s_ref, o_ref):
    """out = x * s, s broadcast over the lane (spatial) axis, in input dtype."""
    o_ref[...] = (x_ref[...] * s_ref[...]).astype(o_ref.dtype)


# ------------------------------------------------------------------ wrapper --

def _pick_block(total, unit, cap):
    """Largest block b with total % b == 0 and (b % unit == 0 or b == total),
    preferring b <= cap.  `cap` is a soft budget: if nothing fits, the smallest
    TPU-legal block is returned."""
    cands = [d for d in range(unit, total, unit) if total % d == 0] + [total]
    fitting = [d for d in cands if d <= cap]
    return max(fitting) if fitting else min(cands)


def se_layer(x_nchw, w1, b1, w2, b2,
             *, block_bytes=4 * 1024 * 1024, vmem_limit_bytes=48 * 1024 * 1024):
    """SELayer forward.

    x_nchw: (N, C, H, W); w1: (R, C); b1: (R,); w2: (C, R); b2: (C,)
    (R = `reduction`, matching nn.Conv2d(channel, reduction, 1) then
     nn.Conv2d(reduction, channel, 1)).
    """
    N, C, H, W = x_nchw.shape
    R = w1.shape[0]
    HW = H * W
    dtype = x_nchw.dtype
    itemsize = jnp.dtype(dtype).itemsize
    rows = N * C

    # ---- tile selection: soft ~block_bytes cap per buffer, (8,128)-legal ----
    thw = _pick_block(HW, 128, max(128, block_bytes // (8 * itemsize)))
    t_rows = _pick_block(rows, 8, max(8, block_bytes // (thw * itemsize)))
    bn = _pick_block(N, 8, max(1, block_bytes // (C * thw * itemsize)))

    # ---- kernel 1: global average pool + excitation -> s (N, C) -------------
    w1t = jnp.transpose(w1)                        # (C, R)
    w2t = jnp.transpose(w2)                        # (R, C)
    b1_2d = b1.reshape(1, R).astype(jnp.float32)
    b2_2d = b2.reshape(1, C).astype(jnp.float32)
    x3 = x_nchw.reshape(N, C, HW)

    s = pl.pallas_call(
        functools.partial(_pool_excite_kernel, inv_hw=1.0 / HW),
        out_shape=jax.ShapeDtypeStruct((N, C), dtype),
        grid_spec=pltpu.PrefetchScalarGridSpec(
            num_scalar_prefetch=0,
            grid=(N // bn, HW // thw),
            in_specs=[
                pl.BlockSpec((bn, C, thw), lambda n, h: (n, 0, h)),   # x
                pl.BlockSpec((C, R), lambda n, h: (0, 0)),            # w1^T
                pl.BlockSpec((1, R), lambda n, h: (0, 0)),            # b1
                pl.BlockSpec((R, C), lambda n, h: (0, 0)),            # w2^T
                pl.BlockSpec((1, C), lambda n, h: (0, 0)),            # b2
            ],
            out_specs=pl.BlockSpec((bn, C), lambda n, h: (n, 0)),
            scratch_shapes=[pltpu.VMEM((bn, C), jnp.float32)],
        ),
        compiler_params=pltpu.CompilerParams(
            dimension_semantics=("parallel", "arbitrary"),
            vmem_limit_bytes=vmem_limit_bytes),
    )(x3, w1t, b1_2d, w2t, b2_2d)

    # ---- kernel 2: out = x * s, 2-D row layout keeps sublanes/lanes dense ----
    x2 = x_nchw.reshape(rows, HW)
    s2 = s.reshape(rows, 1)

    out2 = pl.pallas_call(
        _scale_kernel,
        out_shape=jax.ShapeDtypeStruct((rows, HW), dtype),
        grid_spec=pltpu.PrefetchScalarGridSpec(
            num_scalar_prefetch=0,
            grid=(rows // t_rows, HW // thw),
            in_specs=[
                pl.BlockSpec((t_rows, thw), lambda r, h: (r, h)),     # x
                pl.BlockSpec((t_rows, 1), lambda r, h: (r, 0)),       # s
            ],
            out_specs=pl.BlockSpec((t_rows, thw), lambda r, h: (r, h)),
        ),
        compiler_params=pltpu.CompilerParams(
            dimension_semantics=("parallel", "parallel"),
            vmem_limit_bytes=vmem_limit_bytes),
    )(x2, s2)

    return out2.reshape(N, C, H, W)


# -------------------------------------------------------------- pure-JAX ref --

def _reference(x, w1, b1, w2, b2):
    pooled = jnp.mean(x.astype(jnp.float32), axis=(2, 3))            # (N, C)
    h = jnp.maximum(pooled @ w1.T.astype(jnp.float32) + b1, 0.0)     # (N, R)
    s = jax.nn.sigmoid(h @ w2.T.astype(jnp.float32) + b2)            # (N, C)
    return x * s[:, :, None, None].astype(x.dtype)


if __name__ == "__main__":
    # shapes consistent with SELayer(channel=4, reduction=32)
    N, C, H, W = 2, 4, 16, 16
    REDUCTION = 32

    key = jax.random.PRNGKey(0)
    kx, k1, k2 = jax.random.split(key, 3)

    x = jax.random.normal(kx, (N, C, H, W), dtype=jnp.float32)
    # deterministic "normal_init(std=0.001)"-style params, biases zero
    w1 = 0.001 * jax.random.normal(k1, (REDUCTION, C), dtype=jnp.float32)
    b1 = jnp.zeros((REDUCTION,), dtype=jnp.float32)
    w2 = 0.001 * jax.random.normal(k2, (C, REDUCTION), dtype=jnp.float32)
    b2 = jnp.zeros((C,), dtype=jnp.float32)

    se_fn = jax.jit(se_layer)
    out = jax.block_until_ready(se_fn(x, w1, b1, w2, b2))

    ref = _reference(x, w1, b1, w2, b2)
    assert out.shape == (N, C, H, W)
    assert jnp.allclose(out, ref, atol=1e-5, rtol=1e-5), \
        float(jnp.max(jnp.abs(out - ref)))

    print("KERNEL_OK")
</pallas_src>

<mosaic_0001>
module attributes {stable_mosaic.version = 11 : i64} {
  func.func @_pool_excite_kernel(%arg0: i32, %arg1: i32, %arg2: memref<2x4x256xf32, #tpu.memory_space<vmem>>, %arg3: memref<4x32xf32, #tpu.memory_space<vmem>>, %arg4: memref<1x32xf32, #tpu.memory_space<vmem>>, %arg5: memref<32x4xf32, #tpu.memory_space<vmem>>, %arg6: memref<1x4xf32, #tpu.memory_space<vmem>>, %arg7: memref<2x4xf32, #tpu.memory_space<vmem>>, %arg8: memref<2x4xf32, #tpu.memory_space<vmem>>) attributes {dimension_semantics = [#tpu.dimension_semantics<parallel>, #tpu.dimension_semantics<arbitrary>], iteration_bounds = array<i64: 1, 1>, scalar_prefetch = 0 : i64, scratch_operands = 1 : i64, tpu.core_type = #tpu.core_type<tc>, window_params = [{transform_indices = @transform_0, window_bounds = array<i64: 2, 4, 256>}, {pipeline_mode = #tpu.pipeline_mode<synchronous>, transform_indices = @transform_1, window_bounds = array<i64: 4, 32>}, {pipeline_mode = #tpu.pipeline_mode<synchronous>, transform_indices = @transform_2, window_bounds = array<i64: 1, 32>}, {pipeline_mode = #tpu.pipeline_mode<synchronous>, transform_indices = @transform_3, window_bounds = array<i64: 32, 4>}, {pipeline_mode = #tpu.pipeline_mode<synchronous>, transform_indices = @transform_4, window_bounds = array<i64: 1, 4>}, {transform_indices = @transform_5, window_bounds = array<i64: 2, 4>}]} {
    %c0_i32 = arith.constant 0 : i32
    %0 = arith.cmpi eq, %arg1, %c0_i32 : i32
    %1 = arith.extui %0 : i1 to i32
    %c0_i32_0 = arith.constant 0 : i32
    %2 = arith.cmpi ne, %1, %c0_i32_0 : i32
    scf.if %2 {
      %cst_9 = arith.constant 0.000000e+00 : f32
      %11 = vector.broadcast %cst_9 : f32 to vector<2x4xf32>
      %c0_10 = arith.constant 0 : index
      %c0_11 = arith.constant 0 : index
      %12 = vector.load %arg8[%c0_10, %c0_11] : memref<2x4xf32, #tpu.memory_space<vmem>>, vector<2x4xf32>
      tpu.vector_store %arg8[%c0_10, %c0_11], %11 {strides = array<i32>} : memref<2x4xf32, #tpu.memory_space<vmem>>, vector<2x4xf32>,
    } else {
    }
    %c0 = arith.constant 0 : index
    %c0_1 = arith.constant 0 : index
    %3 = vector.load %arg8[%c0, %c0_1] : memref<2x4xf32, #tpu.memory_space<vmem>>, vector<2x4xf32>
    %c0_2 = arith.constant 0 : index
    %c0_3 = arith.constant 0 : index
    %c0_4 = arith.constant 0 : index
    %4 = vector.load %arg2[%c0_2, %c0_3, %c0_4] : memref<2x4x256xf32, #tpu.memory_space<vmem>>, vector<2x4x256xf32>
    %cst = arith.constant dense<0.000000e+00> : vector<2x4xf32>
    %5 = vector.multi_reduction <add>, %4, %cst [2] : vector<2x4x256xf32> to vector<2x4xf32>
    %6 = arith.addf %3, %5 : vector<2x4xf32>
    %c0_5 = arith.constant 0 : index
    %c0_6 = arith.constant 0 : index
    %7 = vector.load %arg8[%c0_5, %c0_6] : memref<2x4xf32, #tpu.memory_space<vmem>>, vector<2x4xf32>
    tpu.vector_store %arg8[%c0_5, %c0_6], %6 {strides = array<i32>} : memref<2x4xf32, #tpu.memory_space<vmem>>, vector<2x4xf32>,
    %c0_i32_7 = arith.constant 0 : i32
    %8 = arith.cmpi eq, %arg1, %c0_i32_7 : i32
    %9 = arith.extui %8 : i1 to i32
    %c0_i32_8 = arith.constant 0 : i32
    %10 = arith.cmpi ne, %9, %c0_i32_8 : i32
    scf.if %10 {
      %c0_9 = arith.constant 0 : index
      %c0_10 = arith.constant 0 : index
      %11 = vector.load %arg8[%c0_9, %c0_10] : memref<2x4xf32, #tpu.memory_space<vmem>>, vector<2x4xf32>
      %cst_11 = arith.constant 3.906250e-03 : f32
      %12 = vector.broadcast %cst_11 : f32 to vector<2x4xf32>
      %13 = arith.mulf %11, %12 : vector<2x4xf32>
      %c0_12 = arith.constant 0 : index
      %c0_13 = arith.constant 0 : index
      %14 = vector.load %arg3[%c0_12, %c0_13] : memref<4x32xf32, #tpu.memory_space<vmem>>, vector<4x32xf32>
      %cst_14 = arith.constant dense<0.000000e+00> : vector<2x32xf32>
      %15 = tpu.matmul %13, %14, %cst_14 {dimension_numbers = #tpu.dot_dimension_numbers<[1], [0], [0], [1], [0, 0, 1, 1], [], []>} : vector<2x4xf32>, vector<4x32xf32>, vector<2x32xf32> -> vector<2x32xf32>
      %c0_15 = arith.constant 0 : index
      %c0_16 = arith.constant 0 : index
      %16 = vector.load %arg4[%c0_15, %c0_16] : memref<1x32xf32, #tpu.memory_space<vmem>>, vector<1x32xf32>
      %17 = vector.broadcast %16 : vector<1x32xf32> to vector<2x32xf32>
      %18 = arith.addf %15, %17 : vector<2x32xf32>
      %cst_17 = arith.constant 0.000000e+00 : f32
      %19 = vector.broadcast %cst_17 : f32 to vector<2x32xf32>
      %20 = arith.maximumf %18, %19 : vector<2x32xf32>
      %c0_18 = arith.constant 0 : index
      %c0_19 = arith.constant 0 : index
      %21 = vector.load %arg5[%c0_18, %c0_19] : memref<32x4xf32, #tpu.memory_space<vmem>>, vector<32x4xf32>
      %cst_20 = arith.constant dense<0.000000e+00> : vector<2x4xf32>
      %22 = tpu.matmul %20, %21, %cst_20 {dimension_numbers = #tpu.dot_dimension_numbers<[1], [0], [0], [1], [0, 0, 1, 1], [], []>} : vector<2x32xf32>, vector<32x4xf32>, vector<2x4xf32> -> vector<2x4xf32>
      %c0_21 = arith.constant 0 : index
      %c0_22 = arith.constant 0 : index
      %23 = vector.load %arg6[%c0_21, %c0_22] : memref<1x4xf32, #tpu.memory_space<vmem>>, vector<1x4xf32>
      %24 = vector.broadcast %23 : vector<1x4xf32> to vector<2x4xf32>
      %25 = arith.addf %22, %24 : vector<2x4xf32>
      %26 = arith.negf %25 : vector<2x4xf32>
      %27 = math.exp %26 : vector<2x4xf32>
      %cst_23 = arith.constant 1.000000e+00 : f32
      %28 = vector.broadcast %cst_23 : f32 to vector<2x4xf32>
      %29 = arith.addf %28, %27 : vector<2x4xf32>
      %30 = arith.divf %28, %29 : vector<2x4xf32>
      %c0_24 = arith.constant 0 : index
      %c0_25 = arith.constant 0 : index
      %31 = vector.load %arg7[%c0_24, %c0_25] : memref<2x4xf32, #tpu.memory_space<vmem>>, vector<2x4xf32>
      tpu.vector_store %arg7[%c0_24, %c0_25], %30 {strides = array<i32>} : memref<2x4xf32, #tpu.memory_space<vmem>>, vector<2x4xf32>,
    } else {
    }
    return
  }
  func.func @transform_0(%arg0: i32, %arg1: i32) -> (i32, i32, i32) {
    %c0_i32 = arith.constant 0 : i32
    %c0_i32_0 = arith.constant 0 : i32
    return %arg0, %c0_i32, %arg1 : i32, i32, i32
  }
  func.func @transform_1(%arg0: i32, %arg1: i32) -> (i32, i32) {
    %c0_i32 = arith.constant 0 : i32
    %c0_i32_0 = arith.constant 0 : i32
    %c0_i32_1 = arith.constant 0 : i32
    return %c0_i32, %c0_i32_0 : i32, i32
  }
  func.func @transform_2(%arg0: i32, %arg1: i32) -> (i32, i32) {
    %c0_i32 = arith.constant 0 : i32
    %c0_i32_0 = arith.constant 0 : i32
    %c0_i32_1 = arith.constant 0 : i32
    return %c0_i32, %c0_i32_0 : i32, i32
  }
  func.func @transform_3(%arg0: i32, %arg1: i32) -> (i32, i32) {
    %c0_i32 = arith.constant 0 : i32
    %c0_i32_0 = arith.constant 0 : i32
    %c0_i32_1 = arith.constant 0 : i32
    return %c0_i32, %c0_i32_0 : i32, i32
  }
  func.func @transform_4(%arg0: i32, %arg1: i32) -> (i32, i32) {
    %c0_i32 = arith.constant 0 : i32
    %c0_i32_0 = arith.constant 0 : i32
    %c0_i32_1 = arith.constant 0 : i32
    return %c0_i32, %c0_i32_0 : i32, i32
  }
  func.func @transform_5(%arg0: i32, %arg1: i32) -> (i32, i32) {
    %c0_i32 = arith.constant 0 : i32
    %c0_i32_0 = arith.constant 0 : i32
    return %arg0, %c0_i32 : i32, i32
  }
}

module attributes {stable_mosaic.version = 11 : i64} {
  func.func @_scale_kernel(%arg0: i32, %arg1: i32, %arg2: memref<8x256xf32, #tpu.memory_space<vmem>>, %arg3: memref<8x1xf32, #tpu.memory_space<vmem>>, %arg4: memref<8x256xf32, #tpu.memory_space<vmem>>) attributes {dimension_semantics = [#tpu.dimension_semantics<parallel>, #tpu.dimension_semantics<parallel>], iteration_bounds = array<i64: 1, 1>, scalar_prefetch = 0 : i64, scratch_operands = 0 : i64, tpu.core_type = #tpu.core_type<tc>, window_params = [{transform_indices = @transform_0, window_bounds = array<i64: 8, 256>}, {transform_indices = @transform_1, window_bounds = array<i64: 8, 1>}, {transform_indices = @transform_2, window_bounds = array<i64: 8, 256>}]} {
    %c0 = arith.constant 0 : index
    %c0_0 = arith.constant 0 : index
    %0 = vector.load %arg2[%c0, %c0_0] : memref<8x256xf32, #tpu.memory_space<vmem>>, vector<8x256xf32>
    %c0_1 = arith.constant 0 : index
    %c0_2 = arith.constant 0 : index
    %1 = vector.load %arg3[%c0_1, %c0_2] : memref<8x1xf32, #tpu.memory_space<vmem>>, vector<8x1xf32>
    %2 = vector.broadcast %1 : vector<8x1xf32> to vector<8x256xf32>
    %3 = arith.mulf %0, %2 : vector<8x256xf32>
    %c0_3 = arith.constant 0 : index
    %c0_4 = arith.constant 0 : index
    %4 = vector.load %arg4[%c0_3, %c0_4] : memref<8x256xf32, #tpu.memory_space<vmem>>, vector<8x256xf32>
    tpu.vector_store %arg4[%c0_3, %c0_4], %3 {strides = array<i32>} : memref<8x256xf32, #tpu.memory_space<vmem>>, vector<8x256xf32>,
    return
  }
  func.func @transform_0(%arg0: i32, %arg1: i32) -> (i32, i32) {
    %c0_i32 = arith.constant 0 : i32
    return %arg0, %arg1 : i32, i32
  }
  func.func @transform_1(%arg0: i32, %arg1: i32) -> (i32, i32) {
    %c0_i32 = arith.constant 0 : i32
    %c0_i32_0 = arith.constant 0 : i32
    return %arg0, %c0_i32 : i32, i32
  }
  func.func @transform_2(%arg0: i32, %arg1: i32) -> (i32, i32) {
    %c0_i32 = arith.constant 0 : i32
    return %arg0, %arg1 : i32, i32
  }
}

</mosaic_0001>

<bundles_post_ra>
// kernel: se_layer.3
= control target key start
LH: loop header
LB: loop body
LE: loop exit
PB: predicated region body
PF: predicated region fallthrough
CT: control target
= control target key end

     0   :  { %v29_v0 = vmov 0   ;;  %s60_s1 = inlined_call_operand.vmem [shape: f32[8,1], index: 1, kind: input, shape index: {}]   ;;  %s61_s0 = inlined_call_operand.vmem [shape: f32[8,256], index: 0, kind: input, shape index: {}]   ;;  %s62_s2 = inlined_call_operand.vmem [shape: f32[8,256], index: 2, kind: output, shape index: {}]  }
   0x1   :  { %28 = vset.pattern.permute.xlu0 %v29_v0  ;;  %v13_v1 = vld [vmem:[%s60_s1] sm:$0xff]  ;;  %v12_v3 = vld [vmem:[%s61_s0 + $0x8] sm:$0xff] }
   0x2   :  { %16 = vperm.xlu0 %28, %v13_v1   ;;  %v11_v2 = vld [vmem:[%s61_s0] sm:$0xff] }
  0x81   :  { %v17_v4 = vpop.permute.xlu0 %16 }
  0x82   :  { %v19_v5 = vmul.f32 %v17_v4, %v11_v2  ;;  %v20_v6 = vmul.f32 %v17_v4, %v12_v3 }
  0x84   :  { %21 = vst [vmem:[%s62_s2] sm:$0xff] %v19_v5  ;;  %22 = vst [vmem:[%s62_s2 + $0x8] sm:$0xff] %v20_v6 }

// kernel: se_layer.2
= control target key start
LH: loop header
LB: loop body
LE: loop exit
PB: predicated region body
PF: predicated region fallthrough
CT: control target
= control target key end

     0   :  { %vm35_vm0 = vcmask 1043456   ;;  %vm24_vm1 = vcmask 25600   ;;  %v295_v10 = vmov 0.0   ;;  %vm296_vm2 = vmmov 0   ;;  %s366_s0 = inlined_call_operand.vmem [shape: f32[2,4,256], index: 0, kind: input, shape index: {}]   ;;  %s367_s1 = inlined_call_operand.vmem [shape: f32[4,32], index: 1, kind: input, shape index: {}]   ;;  %s368_s3 = inlined_call_operand.vmem [shape: f32[32,4], index: 3, kind: input, shape index: {}]   ;;  %s369_s2 = inlined_call_operand.vmem [shape: f32[1,32], index: 2, kind: input, shape index: {}]   ;;  %s370_s4 = inlined_call_operand.vmem [shape: f32[1,4], index: 4, kind: input, shape index: {}]   ;;  %s371_s5 = inlined_call_operand.vmem [shape: f32[2,4], index: 5, kind: output, shape index: {}]  }
   0x1   :  { %v27_v0 = vld [vmem:[%s366_s0] sm:$0xff]  ;;  %v28_v1 = vld [vmem:[%s366_s0 + $0x8] sm:$0xff]  ;;  %25 = vst.msk [vmem:[#allocation2] sm:$0x3] %vm24_vm1, %v295_v10  ;;  %264 = vmatprep.subr.mxu0 %v295_v10  ;;  %266 = vmatprep.mubr.msk.f32.mxu0 %vm296_vm2, %v295_v10  ;;  %v297_v12 = vmov 0.0|0.0   ;;  %v48_v16 = vlaneseq  ;;  %vm58_vm3 = vcmask 1041409  }
   0x2   :  { %v31_v2 = vcombine.high %v27_v0, %v27_v0  ;;  %v36_v3 = vsel %vm35_vm0, %v27_v0, 0.0  ;;  %v32_v4 = vcombine.high %v28_v1, %v28_v1  ;;  %v41_v6 = vsel %vm35_vm0, %v28_v1, 0.0  ;;  %v69_v11 = vld [vmem:[%s367_s1] sm:$0xf]  ;;  %277 = vmatprep.mubr.msk.f32.mxu1 %vm296_vm2, %v295_v10  ;;  %280 = vmatprep.subr.bf16.mxu1 %v297_v12  ;;  %v156_v14 = vld [vmem:[%s368_s3 + $0x8] sm:$0xff]  ;;  %v157_v29 = vld [vmem:[%s368_s3 + $0x10] sm:$0xff] }
   0x3   :  { %265 = vmatpush3.msk.msra.mxu0 %vm35_vm0, %v69_v11  ;;  %v155_v13 = vld [vmem:[%s368_s3] sm:$0xff]  ;;  %v49_v17 = vand.u32 127, %v48_v16  ;;  %v51_v18 = vshrl.u32 %v48_v16, 7  ;;  %vm77_vm4 = vcmask 31744   ;;  %v158_v30 = vld [vmem:[%s368_s3 + $0x18] sm:$0xff]  ;;  %vm166_vm5 = vcmask 261120  }
   0x4   :  { %v37_v5 = vsel %vm35_vm0, %v31_v2, 0.0  ;;  %v42_v7 = vsel %vm35_vm0, %v32_v4, 0.0  ;;  %v281_v15 = vpack.c.bf16 %v156_v14, %v155_v13  ;;  %v284_v31 = vpack.c.bf16 %v158_v30, %v157_v29  ;;  %v251_v32 = vld [vmem:[%s369_s2] ss:$0 sm:$0xff] }
   0x5   :  { %v38_v8 = vadd.f32 %v37_v5, %v36_v3  ;;  %v43_v9 = vadd.f32 %v42_v7, %v41_v6  ;;  %v52_v20 = vsub.s32 %v49_v17, %v51_v18  ;;  %v254_v37 = vld [vmem:[%s370_s4] ss:$0 sm:$0xff] }
   0x6   :  { %282 = vmatpush3.bf16.msra.mxu1 %v281_v15 }
   0x7   :  { %39 = vadd.xlane.f32.xlu0 %v38_v8  ;;  %283 = vmatprep.subr.bf16.mxu1 %v297_v12 }
   0x8   :  { %v26_v24 = vld [vmem:[#allocation2] sm:$0x3] }
   0xa   :  { %285 = vmatpush3.bf16.msra.mxu1 %v284_v31 }
   0xb   :  { %44 = vadd.xlane.f32.xlu0 %v43_v9 }
  0x94   :  { %v40_v19 = vpop.xlane.xlu0 %39 }
  0x95   :  { %v53_v22 = vrot.slane %v40_v19, %v52_v20 }
  0x98   :  { %v45_v21 = vpop.xlane.xlu0 %44 }
  0x99   :  { %v57_v23 = vrot.slane %v45_v21, %v52_v20 }
  0x9b   :  { %v59_v25 = vsel %vm58_vm3, %v57_v23, %v53_v22 }
  0x9c   :  { %v61_v26 = vadd.f32 %v59_v25, %v26_v24 }
  0x9e   :  { %63 = vst.msk [vmem:[#allocation2] sm:$0x3] %vm24_vm1, %v61_v26 }
  0xa5   :  { %v67_v27 = vld [vmem:[#allocation2] sm:$0x3] }
  0xa6   :  { %v68_v28 = vmul.f32 0.00390625, %v67_v27 }
  0xa8   :  { %267 = vmatmul.mubr.msk.f32.vlgmr.msra.gmra.mrb[0].mxu0 %vm77_vm4, %v68_v28 }
 0x17b   :  { %v150_v33 = vpop.f32.mrb[0].mxu0 }
 0x17c   :  { %v151_v34 = vadd.f32 %v251_v32, %v150_v33  ;;  %v268_v35 = vpop.f32.mrb[1].mxu0 }
 0x17e   :  { %v154_v36 = vmax.f32 %v151_v34, 0.0 }
 0x180   :  { %278 = vmatmul.mubr.msk.f32.vlgmr.msra.gmra.mrb[0].mxu1 %vm166_vm5, %v154_v36 }
 0x253   :  { %v236_v38 = vpop.f32.mrb[0].mxu1 }
 0x254   :  { %v237_v39 = vadd.f32 %v254_v37, %v236_v38  ;;  %v279_v40 = vpop.f32.mrb[1].mxu1 }
 0x256   :  { %v256_v41 = vmul.f32 -1.442695, %v237_v39 }
 0x258   :  { %291 = vpow2.f32 %v256_v41 }
 0x262   :  { %v292_v42 = vpop.eup %291 }
 0x263   :  { %v243_v43 = vadd.f32 1.0, %v292_v42 }
 0x265   :  { %293 = vrcp.f32 %v243_v43 }
 0x26f   :  { %v294_v44 = vpop.eup %293 }
 0x270   :  { %246 = vst.msk [vmem:[%s371_s5] sm:$0x3] %vm24_vm1, %v294_v44 }

</bundles_post_ra>
